<compile_context>
chip_gen: v6e
topology: v6e:2x2x1
jax: 0.10.0
libtpu: 0.0.40
codegen_flags: <defaults>
</compile_context>

<pallas_src>
import jax
import jax.numpy as jnp
from jax.experimental import pallas as pl
from jax.experimental.pallas import tpu as pltpu

LANES = 128
ROW_TILE = 4096  # rows per grid step for large inputs (multiple of 8 and 16)


def _ssu_kernel(x_ref, o_ref):
    x = x_ref[...].astype(jnp.float32)
    z = x - jnp.float32(jnp.pi)
    # where() selects 1 at z == 0, so the 0/0 NaN of the other branch never
    # reaches the output (matches torch.where in the reference module).
    s = jnp.where(z == 0.0, jnp.float32(1.0), jnp.sin(z) / z)
    o_ref[...] = (jnp.float32(jnp.pi) * s).astype(o_ref.dtype)


def shifted_sinc_unit(x, *, row_tile=ROW_TILE):
    """Applies pi * sinc(x - pi) elementwise. x: any shape, float dtype."""
    orig_shape = x.shape
    orig_dtype = x.dtype
    n = x.size
    if n == 0:
        return x

    flat = x.reshape(-1)

    # Minimal padding: only to a multiple of the 128-lane width, and only when
    # needed (trace-time check) -- conv-style activations are usually aligned,
    # so the common case has zero extra HBM passes.
    rem = n % LANES
    needs_pad = rem != 0
    if needs_pad:
        flat = jnp.pad(flat, (0, LANES - rem))
    rows = flat.shape[0] // LANES
    x2d = flat.reshape(rows, LANES)

    # Whole array as one block when small (block == full array dims is always
    # legal); otherwise big lane-dense row tiles. A partial boundary block
    # (rows % row_tile != 0) is masked by Pallas -- no row padding needed.
    block_rows = rows if rows <= row_tile else row_tile
    grid = (pl.cdiv(rows, block_rows),)

    itemsize = jnp.dtype(orig_dtype).itemsize
    out2d = pl.pallas_call(
        _ssu_kernel,
        out_shape=jax.ShapeDtypeStruct((rows, LANES), orig_dtype),
        grid_spec=pltpu.PrefetchScalarGridSpec(
            num_scalar_prefetch=0,
            grid=grid,
            in_specs=[pl.BlockSpec((block_rows, LANES), lambda i: (i, 0))],
            out_specs=pl.BlockSpec((block_rows, LANES), lambda i: (i, 0)),
        ),
        compiler_params=pltpu.CompilerParams(
            dimension_semantics=("parallel",),
            vmem_limit_bytes=32 * 1024 * 1024,
        ),
        cost_estimate=pl.CostEstimate(
            flops=3 * n,
            transcendentals=n,
            bytes_accessed=2 * n * itemsize,
        ),
    )(x2d)

    out_flat = out2d.reshape(-1)
    if needs_pad:
        out_flat = out_flat[:n]
    return out_flat.reshape(orig_shape)


def _reference(x):
    z = x.astype(jnp.float32) - jnp.pi
    s = jnp.where(z == 0, 1.0, jnp.sin(z) / z)
    return (jnp.pi * s).astype(x.dtype)


if __name__ == "__main__":
    key = jax.random.PRNGKey(0)

    # 1) NCHW f32 input (conv-style activation); aligned path (no pad/slice).
    x = jax.random.normal(key, (2, 4, 16, 16), dtype=jnp.float32)
    x = x.at[0, 0, 0, 0].set(jnp.pi)  # exact z == 0 point
    y = jax.block_until_ready(shifted_sinc_unit(x))
    y_ref = _reference(x)
    assert y.shape == x.shape and y.dtype == x.dtype
    assert jnp.allclose(y, y_ref, atol=1e-6, rtol=1e-6), "mismatch (f32 aligned)"

    # 2) Unaligned element count (exercises the minimal pad + unpad path).
    x2 = jax.random.normal(jax.random.PRNGKey(1), (3, 5, 7), dtype=jnp.float32)
    y2 = jax.block_until_ready(shifted_sinc_unit(x2))
    assert jnp.allclose(y2, _reference(x2), atol=1e-6, rtol=1e-6), "mismatch (pad)"

    # 3) Multi-block grid with a partial boundary block (small row_tile forces
    #    20 rows into 3 blocks of 8).
    x3 = jax.random.normal(jax.random.PRNGKey(2), (2, 4, 16, 20),
                           dtype=jnp.float32)
    y3 = jax.block_until_ready(shifted_sinc_unit(x3, row_tile=8))
    assert jnp.allclose(y3, _reference(x3), atol=1e-6, rtol=1e-6), "mismatch (grid)"

    # 4) bf16 input: dtype stays bf16 end-to-end (half the HBM traffic);
    #    compute is f32 inside the kernel, cast back on store.
    x4 = jax.random.normal(jax.random.PRNGKey(3), (2, 4, 16, 16),
                           dtype=jnp.bfloat16)
    y4 = jax.block_until_ready(shifted_sinc_unit(x4))
    assert y4.dtype == jnp.bfloat16
    assert jnp.allclose(y4.astype(jnp.float32),
                        _reference(x4).astype(jnp.float32),
                        atol=2e-2, rtol=2e-2), "mismatch (bf16)"

    print("KERNEL_OK")
</pallas_src>

<mosaic_0001>
module attributes {stable_mosaic.version = 11 : i64} {
  func.func @_ssu_kernel(%arg0: i32, %arg1: memref<16x128xf32, #tpu.memory_space<vmem>>, %arg2: memref<16x128xf32, #tpu.memory_space<vmem>>) attributes {dimension_semantics = [#tpu.dimension_semantics<parallel>], iteration_bounds = array<i64: 1>, scalar_prefetch = 0 : i64, scratch_operands = 0 : i64, tpu.core_type = #tpu.core_type<tc>, window_params = [{transform_indices = @transform_0, window_bounds = array<i64: 16, 128>}, {transform_indices = @transform_1, window_bounds = array<i64: 16, 128>}]} {
    %c0 = arith.constant 0 : index
    %c0_0 = arith.constant 0 : index
    %0 = vector.load %arg1[%c0, %c0_0] : memref<16x128xf32, #tpu.memory_space<vmem>>, vector<16x128xf32>
    %cst = arith.constant 3.14159274 : f32
    %1 = vector.broadcast %cst : f32 to vector<16x128xf32>
    %2 = arith.subf %0, %1 : vector<16x128xf32>
    %cst_1 = arith.constant 0.000000e+00 : f32
    %3 = vector.broadcast %cst_1 : f32 to vector<16x128xf32>
    %4 = arith.cmpf oeq, %2, %3 : vector<16x128xf32>
    %5 = math.sin %2 : vector<16x128xf32>
    %6 = arith.divf %5, %2 : vector<16x128xf32>
    %cst_2 = arith.constant 1.000000e+00 : f32
    %7 = vector.broadcast %cst_2 : f32 to vector<16x128xf32>
    %8 = arith.select %4, %7, %6 : vector<16x128xi1>, vector<16x128xf32>
    %cst_3 = arith.constant 3.14159274 : f32
    %9 = vector.broadcast %cst_3 : f32 to vector<16x128xf32>
    %10 = arith.mulf %9, %8 : vector<16x128xf32>
    %c0_4 = arith.constant 0 : index
    %c0_5 = arith.constant 0 : index
    %11 = vector.load %arg2[%c0_4, %c0_5] : memref<16x128xf32, #tpu.memory_space<vmem>>, vector<16x128xf32>
    tpu.vector_store %arg2[%c0_4, %c0_5], %10 {strides = array<i32>} : memref<16x128xf32, #tpu.memory_space<vmem>>, vector<16x128xf32>,
    return
  }
  func.func @transform_0(%arg0: i32) -> (i32, i32) {
    %c0_i32 = arith.constant 0 : i32
    %c0_i32_0 = arith.constant 0 : i32
    return %arg0, %c0_i32 : i32, i32
  }
  func.func @transform_1(%arg0: i32) -> (i32, i32) {
    %c0_i32 = arith.constant 0 : i32
    %c0_i32_0 = arith.constant 0 : i32
    return %arg0, %c0_i32 : i32, i32
  }
}

</mosaic_0001>

<bundles_post_ra>
// kernel: tpu_custom_call.1
= control target key start
LH: loop header
LB: loop body
LE: loop exit
PB: predicated region body
PF: predicated region fallthrough
CT: control target
= control target key end

     0   :  { %6 = vsyncpa [#allocation3], 0  ;;  %s468_s0 = inlined_call_operand.hbm [shape: f32[16,128], index: 0, kind: input, shape index: {}]   ;;  %s469_s1 = inlined_call_operand.hbm [shape: f32[16,128], index: 1, kind: output, shape index: {}]  }
   0x1   :  { %7 = vsyncpa [#allocation4], 0  ;;  %s348_s6 = smov [#allocation2]  }
   0x2   :  { %s13_s7 = sshll.u32 %s348_s6, 4  ;;  %s14_s7 = int_to_ptr.vmem [resolvable:$true] %s13_s7 }
   0x3   :  { %s312_s8 = scalar_lea.vmem %s14_s7, 256  ;;  %p317_p1 = scmp.lt.s32.totalorder %s14_s7, %s14_s7 }
   0x4   :  { %p313_p0 = scmp.ne.s32.totalorder %s14_s7, %s312_s8  ;;  %p318_p2 = scmp.lt.s32.totalorder %s312_s8, %s312_s8 }
   0x6   :  { %p319_p3 = por %p318_p2, %p317_p1 }
   0x8   :  { %p320_p4 = pnand %p319_p3, %p313_p0 }
   0xa   :  { %323 = shalt.err (!%p320_p4)
}
   0xb   :  { %s349_s9 = smov 128   ;;  %s350_s10 = smov 8  }
   0xc   :  { %19 = dma.hbm_to_vmem [thread:$0]  %s468_s0, 256, %s14_s7, [#allocation3], %s349_s9, %s349_s9, %s350_s10  }
   0xd   :  { %344 = dma.done.wait [#allocation3], 256  }
   0xe   :  { %345 = vsyncadd [#allocation3], 4294967040  ;;  %v23_v0 = vld [vmem:[#allocation2] sm:$0xff]  ;;  %v24_v1 = vld [vmem:[#allocation2 + $0x8] sm:$0xff]  ;;  %v351_v23 = vmov 683565275  }
   0xf   :  { %v374_v2 = vadd.f32 -3.1415927, %v23_v0  ;;  %v376_v3 = vadd.f32 -3.1415927, %v24_v1  ;;  %v352_v25 = vmov 2475754826  }
  0x10   :  { %v353_v27 = vmov 2131351028   ;;  %v354_v29 = vmov 2102212464   ;;  %v355_v31 = vmov 920167782  }
  0x11   :  { %v29_v4 = vand.u32 2147483647, %v374_v2  ;;  %v32_v5 = vand.u32 2139095040, %v374_v2  ;;  %v133_v8 = vand.u32 2147483647, %v376_v3  ;;  %v136_v9 = vand.u32 2139095040, %v376_v3 }
  0x12   :  { %v356_v38 = vmov 1326507024   ;;  %vm31_vm14 = vcmp.lt.s32.totalorder %v374_v2, 0  ;;  %s357_s0 = smov [#allocation5]  }
  0x13   :  { %v33_v6 = vshrl.u32 %v32_v5, 23  ;;  %v36_v7 = vand.u32 8388607, %v29_v4  ;;  %v137_v11 = vshrl.u32 %v136_v9, 23  ;;  %v386_v15 = vand.u32 8388607, %v133_v8 }
  0x14   :  { %vm435_vm15 = vcmp.le.f32.partialorder %v29_v4, 0.7853982  ;;  %s252_s13 = sshll.u32 %s357_s0, 4  ;;  %s253_s13 = int_to_ptr.vmem [resolvable:$true] %s252_s13 }
  0x15   :  { %v266_v10 = vadd.s32 4294967169, %v33_v6  ;;  %v37_v13 = vor.u32 8388608, %v36_v7  ;;  %v270_v14 = vadd.s32 4294967169, %v137_v11  ;;  %v141_v21 = vor.u32 8388608, %v386_v15  ;;  %s324_s14 = scalar_lea.vmem %s253_s13, 256  ;;  %p329_p6 = scmp.lt.s32.totalorder %s253_s13, %s253_s13 }
  0x16   :  { %p325_p5 = scmp.ne.s32.totalorder %s253_s13, %s324_s14  ;;  %p330_p7 = scmp.lt.s32.totalorder %s324_s14, %s324_s14 }
  0x17   :  { %v39_v12 = vadd.s32 1, %v266_v10  ;;  %v143_v17 = vadd.s32 1, %v270_v14  ;;  %v388_v20 = vshll.u32 %v37_v13, 8 }
  0x18   :  { %p331_p8 = por %p330_p7, %p329_p6 }
  0x19   :  { %vm40_vm0 = vcmp.gt.s32.totalorder %v39_v12, 0  ;;  %vm144_vm1 = vcmp.gt.s32.totalorder %v143_v17, 0 }
  0x1a   :  { %v41_v16 = vsel %vm40_vm0, %v39_v12, 0  ;;  %v145_v43 = vsel %vm144_vm1, %v143_v17, 0  ;;  %vm135_vm0 = vcmp.lt.s32.totalorder %v376_v3, 0  ;;  %vm448_vm1 = vcmp.le.f32.partialorder %v133_v8, 0.7853982  ;;  %p332_p9 = pnand %p331_p8, %p325_p5 }
  0x1b   :  { %v42_v18 = vshrl.u32 %v41_v16, 5  ;;  %v43_v19 = vand.u32 31, %v41_v16  ;;  %v146_v46 = vshrl.u32 %v145_v43, 5  ;;  %v147_v47 = vand.u32 31, %v145_v43 }
  0x1d   :  { %v44_v22 = vsub.s32 32, %v43_v19  ;;  %v46_v24 = vshll.u32 %v351_v23, %v43_v19  ;;  %v49_v26 = vshll.u32 %v352_v25, %v43_v19  ;;  %v52_v28 = vshll.u32 %v353_v27, %v43_v19 }
  0x1e   :  { %v55_v30 = vshll.u32 %v354_v29, %v43_v19  ;;  %v58_v32 = vshll.u32 %v355_v31, %v43_v19  ;;  %vm61_vm2 = vcmp.lt.s32.totalorder %v42_v18, 1  ;;  %vm62_vm3 = vcmp.lt.s32.totalorder %v42_v18, 2 }
  0x1f   :  { %v45_v33 = vshrl.u32 %v351_v23, %v44_v22  ;;  %v47_v34 = vshrl.u32 %v352_v25, %v44_v22  ;;  %v50_v35 = vshrl.u32 %v353_v27, %v44_v22  ;;  %v53_v36 = vshrl.u32 %v354_v29, %v44_v22 }
  0x20   :  { %v56_v37 = vshrl.u32 %v355_v31, %v44_v22  ;;  %v59_v39 = vshrl.u32 %v356_v38, %v44_v22  ;;  %vm63_vm4 = vcmp.lt.s32.totalorder %v42_v18, 3  ;;  %vm64_vm5 = vcmp.lt.s32.totalorder %v42_v18, 4 }
  0x21   :  { %v48_v40 = vor.u32 %v47_v34, %v46_v24  ;;  %v51_v41 = vor.u32 %v50_v35, %v49_v26  ;;  %v54_v42 = vor.u32 %v53_v36, %v52_v28  ;;  %v148_v55 = vsub.s32 32, %v147_v47 }
  0x22   :  { %v57_v44 = vor.u32 %v56_v37, %v55_v30  ;;  %v60_v45 = vor.u32 %v59_v39, %v58_v32  ;;  %v150_v59 = vshll.u32 %v351_v23, %v147_v47  ;;  %v153_v9 = vshll.u32 %v352_v25, %v147_v47 }
  0x23   :  { %v65_v48 = vsel %vm61_vm2, %v45_v33, %v48_v40  ;;  %v66_v49 = vsel %vm64_vm5, %v54_v42, 2102212464  ;;  %v69_v50 = vsel %vm61_vm2, %v48_v40, %v51_v41  ;;  %v73_v51 = vsel %vm61_vm2, %v51_v41, %v54_v42 }
  0x24   :  { %v67_v52 = vsel %vm63_vm4, %v51_v41, %v66_v49  ;;  %v70_v53 = vsel %vm64_vm5, %v57_v44, 920167782  ;;  %v74_v54 = vsel %vm64_vm5, %v60_v45, 1326507024  ;;  %v149_v63 = vshrl.u32 %v351_v23, %v148_v55 }
  0x25   :  { %v68_v56 = vsel %vm62_vm3, %v65_v48, %v67_v52  ;;  %v71_v57 = vsel %vm63_vm4, %v54_v42, %v70_v53  ;;  %v75_v58 = vsel %vm63_vm4, %v57_v44, %v74_v54  ;;  %v151_v7 = vshrl.u32 %v352_v25, %v148_v55 }
  0x26   :  { %v72_v60 = vsel %vm62_vm3, %v69_v50, %v71_v57  ;;  %v76_v61 = vsel %vm62_vm3, %v73_v51, %v75_v58  ;;  %v84_v62 = vmul.u32 %v388_v20, %v68_v56  ;;  %v154_v10 = vshrl.u32 %v353_v27, %v148_v55 }
  0x27   :  { %v403_v0 = vmul.u32.u64.low %v388_v20, %v76_v61  ;;  %v404_v1 = vmul.u32.u64.high %v388_v20, %v76_v61, %v403_v0  ;;  %v407_v5 = vmul.u32.u64.low %v388_v20, %v72_v60  ;;  %v408_v6 = vmul.u32.u64.high %v388_v20, %v72_v60, %v407_v5 }
  0x28   :  { %v156_v11 = vshll.u32 %v353_v27, %v147_v47  ;;  %v157_v12 = vshrl.u32 %v354_v29, %v148_v55  ;;  %v159_v13 = vshll.u32 %v354_v29, %v147_v47  ;;  %v160_v14 = vshrl.u32 %v355_v31, %v148_v55 }
  0x29   :  { %v162_v16 = vshll.u32 %v355_v31, %v147_v47  ;;  %v152_v17 = vor.u32 %v151_v7, %v150_v59  ;;  %v155_v18 = vor.u32 %v154_v10, %v153_v9  ;;  %v163_v19 = vshrl.u32 %v356_v38, %v148_v55 }
  0x2a   :  { %vm165_vm6 = vcmp.lt.s32.totalorder %v146_v46, 1  ;;  %vm86_vm7 = vc.u32 %v404_v1, %v407_v5  ;;  %v87_v22 = vadd.s32 1, %v408_v6  ;;  %v158_v23 = vor.u32 %v157_v12, %v156_v11 }
  0x2b   :  { %v181_v20 = vshll.u32 %v141_v21, 8  ;;  %v161_v24 = vor.u32 %v160_v14, %v159_v13  ;;  %v164_v25 = vor.u32 %v163_v19, %v162_v16  ;;  %vm166_vm8 = vcmp.lt.s32.totalorder %v146_v46, 2 }
  0x2c   :  { %vm167_vm9 = vcmp.lt.s32.totalorder %v146_v46, 3  ;;  %v88_v26 = vsel %vm86_vm7, %v87_v22, %v408_v6  ;;  %vm168_vm10 = vcmp.lt.s32.totalorder %v146_v46, 4  ;;  %v169_v27 = vsel %vm165_vm6, %v149_v63, %v152_v17 }
  0x2d   :  { %v173_v28 = vsel %vm165_vm6, %v152_v17, %v155_v18  ;;  %v89_v29 = vadd.s32 %v88_v26, %v84_v62  ;;  %v170_v30 = vsel %vm168_vm10, %v158_v23, 2102212464  ;;  %v174_v31 = vsel %vm168_vm10, %v161_v24, 920167782 }
  0x2e   :  { %v177_v32 = vsel %vm165_vm6, %v155_v18, %v158_v23  ;;  %v171_v33 = vsel %vm167_vm9, %v155_v18, %v170_v30  ;;  %v175_v34 = vsel %vm167_vm9, %v158_v23, %v174_v31  ;;  %v178_v15 = vsel %vm168_vm10, %v164_v25, 1326507024 }
  0x2f   :  { %v90_v21 = vadd.s32 536870912, %v89_v29  ;;  %v176_v35 = vsel %vm166_vm8, %v173_v28, %v175_v34  ;;  %v179_v36 = vsel %vm167_vm9, %v161_v24, %v178_v15  ;;  %v172_v37 = vsel %vm166_vm8, %v169_v27, %v171_v33 }
  0x30   :  { %v180_v38 = vsel %vm166_vm8, %v177_v32, %v179_v36  ;;  %v421_v39 = vmul.u32.u64.low %v181_v20, %v176_v35  ;;  %v422_v40 = vmul.u32.u64.high %v181_v20, %v176_v35, %v421_v39  ;;  %v188_v45 = vmul.u32 %v181_v20, %v172_v37 }
  0x31   :  { %v91_v41 = vshrl.u32 %v90_v21, 30  ;;  %v424_v42 = vmul.u32.u64.low %v181_v20, %v180_v38  ;;  %v425_v43 = vmul.u32.u64.high %v181_v20, %v180_v38, %v424_v42  ;;  %v85_v57 = vadd.s32 %v407_v5, %v404_v1 }
  0x32   :  { %v191_v47 = vadd.s32 1, %v422_v40  ;;  %vm121_vm5 = vweird.f32 %v374_v2  ;;  %vm27_vm6 = vcmp.eq.f32.partialorder %v374_v2, 0.0  ;;  %vm225_vm10 = vweird.f32 %v376_v3 }
  0x33   :  { %v92_v44 = vshll.u32 %v91_v41, 30  ;;  %vm190_vm11 = vc.u32 %v425_v43, %v421_v39  ;;  %v189_v17 = vadd.s32 %v421_v39, %v425_v43  ;;  %v115_v18 = vsub.s32 4, %v91_v41 }
  0x34   :  { %v192_v49 = vsel %vm190_vm11, %v191_v47, %v422_v40  ;;  %vm28_vm11 = vcmp.eq.f32.partialorder %v376_v3, 0.0 }
  0x35   :  { %v93_v48 = vsub.s32 %v89_v29, %v92_v44  ;;  %v193_v51 = vadd.s32 %v192_v49, %v188_v45  ;;  %v116_v28 = vsel %vm31_vm14, %v115_v18, %v91_v41 }
  0x36   :  { %v118_v4 = vsel %vm435_vm15, 0, %v116_v28 }
  0x37   :  { %v95_v50 = vsub.s32 0, %v93_v48  ;;  %v194_v52 = vadd.s32 536870912, %v193_v51  ;;  %v122_v15 = vadd.s32 3, %v118_v4 }
  0x39   :  { %v267_v46 = vmin.u32 %v95_v50, %v93_v48  ;;  %v195_v54 = vshrl.u32 %v194_v52, 30  ;;  %v123_v38 = vand.u32 3, %v122_v15 }
  0x3b   :  { %v97_v53 = vclz %v267_v46  ;;  %v196_v56 = vshll.u32 %v195_v54, 30  ;;  %v219_v35 = vsub.s32 4, %v195_v54  ;;  %vm128_vm2 = vcmp.eq.s32.totalorder %v123_v38, 2 }
  0x3c   :  { %vm125_vm3 = vcmp.eq.s32.totalorder %v123_v38, 0  ;;  %vm124_vm4 = vcmp.lt.s32.totalorder %v123_v38, 2 }
  0x3d   :  { %v268_v55 = vadd.s32 4294967294, %v97_v53  ;;  %v197_v59 = vsub.s32 %v193_v51, %v196_v56  ;;  %v220_v40 = vsel %vm135_vm0, %v219_v35, %v195_v54 }
  0x3e   :  { %v222_v43 = vsel %vm448_vm1, 0, %v220_v40 }
  0x3f   :  { %vm269_vm12 = vcmp.lt.s32.totalorder %v268_v55, 0  ;;  %v199_v63 = vsub.s32 0, %v197_v59 }
  0x40   :  { %v100_v58 = vsel %vm269_vm12, 0, %v268_v55 }
  0x41   :  { %v101_v60 = vsub.s32 32, %v100_v58  ;;  %v102_v61 = vshll.u32 %v93_v48, %v100_v58  ;;  %v105_v62 = vsub.s32 4294967266, %v100_v58  ;;  %v271_v7 = vmin.u32 %v199_v63, %v197_v59 }
  0x42   :  { %v226_v48 = vadd.s32 3, %v222_v43 }
  0x43   :  { %v103_v0 = vshrl.u32 %v85_v57, %v101_v60  ;;  %v106_v6 = vadd.s32 127, %v105_v62  ;;  %v201_v11 = vclz %v271_v7 }
  0x44   :  { %v227_v53 = vand.u32 3, %v226_v48 }
  0x45   :  { %v104_v9 = vor.u32 %v103_v0, %v102_v61  ;;  %v107_v10 = vshll.u32 %v106_v6, 23  ;;  %v272_v14 = vadd.s32 4294967294, %v201_v11 }
  0x46   :  { %vm232_vm7 = vcmp.eq.s32.totalorder %v227_v53, 2  ;;  %vm229_vm8 = vcmp.eq.s32.totalorder %v227_v53, 0  ;;  %vm228_vm9 = vcmp.lt.s32.totalorder %v227_v53, 2 }
  0x47   :  { %v108_v12 = vor.u32 4788187, %v107_v10  ;;  %v111_v13 = vcvt.s32.f32 %v104_v9  ;;  %vm273_vm13 = vcmp.lt.s32.totalorder %v272_v14, 0 }
  0x48   :  { %v204_v5 = vsel %vm273_vm13, 0, %v272_v14 }
  0x49   :  { %v109_v16 = vand.u32 2147483647, %v108_v12  ;;  %v205_v19 = vsub.s32 32, %v204_v5  ;;  %v206_v22 = vshll.u32 %v197_v59, %v204_v5  ;;  %v209_v23 = vsub.s32 4294967266, %v204_v5 }
  0x4b   :  { %v112_v1 = vmul.f32 %v111_v13, %v109_v16  ;;  %v207_v25 = vshrl.u32 %v189_v17, %v205_v19  ;;  %v210_v26 = vadd.s32 127, %v209_v23 }
  0x4d   :  { %v113_v24 = vxor.u32 2147483648, %v112_v1  ;;  %v208_v30 = vor.u32 %v207_v25, %v206_v22  ;;  %v211_v31 = vshll.u32 %v210_v26, 23 }
  0x4f   :  { %v114_v27 = vsel %vm31_vm14, %v113_v24, %v112_v1  ;;  %v212_v32 = vor.u32 4788187, %v211_v31  ;;  %v215_v33 = vcvt.s32.f32 %v208_v30 }
  0x50   :  { %v117_v29 = vsel %vm435_vm15, %v374_v2, %v114_v27 }
  0x51   :  { %292 = vcosq.f32 %v117_v29  ;;  %v213_v34 = vand.u32 2147483647, %v212_v32 }
  0x52   :  { %294 = vsinq.f32 %v117_v29 }
  0x53   :  { %296 = vrcp.f32 %v374_v2  ;;  %v216_v21 = vmul.f32 %v215_v33, %v213_v34 }
  0x55   :  { %v217_v37 = vxor.u32 2147483648, %v216_v21 }
  0x57   :  { %v218_v39 = vsel %vm135_vm0, %v217_v37, %v216_v21 }
  0x58   :  { %v221_v41 = vsel %vm448_vm1, %v376_v3, %v218_v39 }
  0x59   :  { %298 = vcosq.f32 %v221_v41 }
  0x5a   :  { %300 = vsinq.f32 %v221_v41 }
  0x5b   :  { %302 = vrcp.f32 %v376_v3 }
  0x5e   :  { %v293_v42 = vpop.eup %292 }
  0x5f   :  { %v295_v44 = vpop.eup %294  ;;  %v129_v8 = vxor.u32 2147483648, %v293_v42 }
  0x60   :  { %v126_v45 = vxor.u32 2147483648, %v295_v44  ;;  %v297_v49 = vpop.eup %296 }
  0x61   :  { %v130_v47 = vsel %vm128_vm2, %v129_v8, %v295_v44 }
  0x62   :  { %v127_v50 = vsel %vm125_vm3, %v293_v42, %v126_v45 }
  0x63   :  { %v131_v51 = vsel %vm124_vm4, %v127_v50, %v130_v47 }
  0x64   :  { %v132_v46 = vsel %vm121_vm5, nan, %v131_v51 }
  0x65   :  { %v238_v52 = vmul.f32 %v297_v49, %v132_v46 }
  0x66   :  { %v299_v56 = vpop.eup %298 }
  0x67   :  { %v241_v54 = vsel %vm27_vm6, 1.0, %v238_v52  ;;  %v301_v57 = vpop.eup %300  ;;  %v233_v58 = vxor.u32 2147483648, %v299_v56 }
  0x68   :  { %v243_v55 = vmul.f32 3.1415927, %v241_v54  ;;  %v230_v59 = vxor.u32 2147483648, %v301_v57  ;;  %v303_v61 = vpop.eup %302 }
  0x69   :  { %v234_v60 = vsel %vm232_vm7, %v233_v58, %v301_v57 }
  0x6a   :  { %245 = vst [vmem:[#allocation5] sm:$0xff] %v243_v55  ;;  %v231_v62 = vsel %vm229_vm8, %v299_v56, %v230_v59 }
  0x6b   :  { %v235_v63 = vsel %vm228_vm9, %v231_v62, %v234_v60 }
  0x6c   :  { %v236_v2 = vsel %vm225_vm10, nan, %v235_v63 }
  0x6d   :  { %v240_v0 = vmul.f32 %v303_v61, %v236_v2 }
  0x6f   :  { %v242_v6 = vsel %vm28_vm11, 1.0, %v240_v0 }
  0x70   :  { %v244_v7 = vmul.f32 3.1415927, %v242_v6 }
  0x72   :  { %246 = vst [vmem:[#allocation5 + $0x8] sm:$0xff] %v244_v7 }
  0x73   :  { %335 = shalt.err (!%p332_p9)
}
  0x74   :  { %258 = dma.vmem_to_hbm [thread:$0]  %s253_s13, 256, %s469_s1, [#allocation4], %s349_s9, %s349_s9, %s350_s10  }
  0x75   :  { %346 = dma.done.wait [#allocation4], 256  }
  0x76   :  { %347 = vsyncadd [#allocation4], 4294967040 }
  0x77   :  { %262 = vsyncpa [#allocation3], 1 }
  0x78   :  { %263 = vsyncpa [#allocation4], 1 }

</bundles_post_ra>
